<compile_context>
chip_gen: v6e
topology: v6e:2x2x1
jax: 0.10.0
libtpu: 0.0.40
codegen_flags: <defaults>
</compile_context>

<pallas_src>
import functools

import jax
import jax.numpy as jnp
from jax.experimental import pallas as pl
from jax.experimental.pallas import tpu as pltpu


LANE = 128


def _round_up(x, m):
    return (x + m - 1) // m * m


# --------------------------------------------------------------------------
# Pallas kernel: one SAGEConv layer, K-tiled aggregation + fused epilogue.
# --------------------------------------------------------------------------
def sage_conv_kernel(a_ref, x_ref, xr_ref, dinv_ref, wl_ref, wr_ref, b_ref,
                     o_ref, acc_ref, *, apply_relu):
    # a_ref    : (TM, TK)    int8 un-normalized adjacency counts (row block, K tile)
    # x_ref    : (TK, Cp)    bf16 neighbor-feature K tile
    # xr_ref   : (TM, Cp)    bf16 root features for this row block (const over k)
    # dinv_ref : (TM, 1)     f32 1/deg for mean normalization
    # wl_ref   : (Cp, Coutp) bf16 neighbor weight
    # wr_ref   : (Cp, Coutp) bf16 root weight
    # b_ref    : (1, Coutp)  f32 bias
    # acc_ref  : (TM, Cp)    f32 un-normalized aggregation accumulator (scratch)
    k = pl.program_id(1)

    @pl.when(k == 0)
    def _():
        acc_ref[...] = jnp.zeros_like(acc_ref)

    # Neighbor sum for this K tile on the MXU (int8 counts -> bf16, f32 acc).
    a = a_ref[...].astype(jnp.bfloat16)
    acc_ref[...] += jnp.dot(a, x_ref[...], preferred_element_type=jnp.float32)

    @pl.when(k == pl.num_programs(1) - 1)
    def _():
        # Mean normalization in f32 after the matmul (exact 1/deg, no bf16 loss).
        agg = acc_ref[...] * dinv_ref[...]
        out = jnp.dot(agg.astype(jnp.bfloat16), wl_ref[...],
                      preferred_element_type=jnp.float32)
        out = out + jnp.dot(xr_ref[...], wr_ref[...],
                            preferred_element_type=jnp.float32)
        out = out + b_ref[...]
        if apply_relu:
            out = jnp.maximum(out, 0.0)
        o_ref[...] = out.astype(o_ref.dtype)


def _choose_tiles(n_p, c_p):
    # Row tile: >= 2 row-grid steps so both v7x TensorCores get work even on
    # tiny graphs; 128 otherwise (matches the v5e 128-row MXU tile).
    tm = 128
    if n_p // tm < 2:
        tm = 64
    # K tile: as large as divides n_p while keeping the double-buffered X tile
    # comfortably inside a v7x-safe VMEM budget.
    tk = 128
    for cand in (512, 256):
        if n_p % cand == 0 and 2 * cand * c_p * 2 <= 8 * 1024 * 1024:
            tk = cand
            break
    return tm, tk


def _vmem_limit_bytes(tm, tk, c_p, cout_p, out_bytes):
    buf = 0
    buf += 2 * tm * tk * 1            # A counts (int8), double-buffered
    buf += 2 * tk * c_p * 2           # X K-tile (bf16)
    buf += 2 * tm * c_p * 2           # root X block (bf16)
    buf += 2 * tm * 4                 # 1/deg
    buf += 2 * 2 * c_p * cout_p * 2   # W_l, W_r (bf16)
    buf += 2 * cout_p * 4             # bias
    buf += 2 * tm * cout_p * out_bytes
    buf += tm * c_p * 4               # accumulator scratch
    # Generous headroom for compiler-internal scratch; capped well below the
    # smallest physical VMEM (v7x: 64 MiB).
    return int(min(48 * 1024 * 1024, max(4 * buf, 8 * 1024 * 1024)))


def sage_conv(a_counts, x_p, deg_inv, w_l, w_r, b, *, apply_relu, out_dtype):
    n_p, c_p = x_p.shape
    cout_p = w_l.shape[1]
    tm, tk = _choose_tiles(n_p, c_p)
    assert n_p % tm == 0 and n_p % tk == 0

    out_bytes = jnp.dtype(out_dtype).itemsize
    flops = 2 * n_p * n_p * c_p + 2 * 2 * n_p * c_p * cout_p
    bytes_accessed = (n_p * n_p                              # A (int8)
                      + (n_p // tm) * n_p * c_p * 2          # X per row block
                      + n_p * c_p * 2                        # root X
                      + 2 * c_p * cout_p * 2                 # weights
                      + n_p * cout_p * out_bytes)            # output

    kernel = functools.partial(sage_conv_kernel, apply_relu=apply_relu)
    return pl.pallas_call(
        kernel,
        out_shape=jax.ShapeDtypeStruct((n_p, cout_p), out_dtype),
        grid_spec=pltpu.PrefetchScalarGridSpec(
            num_scalar_prefetch=0,
            grid=(n_p // tm, n_p // tk),
            in_specs=[
                pl.BlockSpec((tm, tk), lambda i, k: (i, k)),        # A counts
                pl.BlockSpec((tk, c_p), lambda i, k: (k, 0)),       # X K-tile
                pl.BlockSpec((tm, c_p), lambda i, k: (i, 0)),       # root X rows
                pl.BlockSpec((tm, 1), lambda i, k: (i, 0)),         # 1/deg
                pl.BlockSpec((c_p, cout_p), lambda i, k: (0, 0)),   # W_l
                pl.BlockSpec((c_p, cout_p), lambda i, k: (0, 0)),   # W_r
                pl.BlockSpec((1, cout_p), lambda i, k: (0, 0)),     # bias
            ],
            out_specs=pl.BlockSpec((tm, cout_p), lambda i, k: (i, 0)),
            scratch_shapes=[pltpu.VMEM((tm, c_p), jnp.float32)],
        ),
        compiler_params=pltpu.CompilerParams(
            dimension_semantics=("parallel", "arbitrary"),
            vmem_limit_bytes=_vmem_limit_bytes(tm, tk, c_p, cout_p, out_bytes)),
        cost_estimate=pl.CostEstimate(flops=int(flops), transcendentals=0,
                                      bytes_accessed=int(bytes_accessed)),
    )(a_counts, x_p, x_p, deg_inv, w_l, w_r, b)


# --------------------------------------------------------------------------
# Glue: dense int8 edge-count adjacency + f32 inverse degree.
# TODO(synk): for realistic graph sizes replace the dense N x N adjacency with
# a CSR scalar-prefetch formulation (PrefetchScalarGridSpec row offsets /
# column indices + manual gather DMA) so HBM traffic is O(E) not O(N^2).
# --------------------------------------------------------------------------
def build_adjacency_counts(edge_index, num_nodes, padded_nodes=None):
    del num_nodes  # padded rows/cols simply stay zero
    n_p = padded_nodes
    src, dst = edge_index[0], edge_index[1]
    counts = jnp.zeros((n_p, n_p), jnp.float32).at[dst, src].add(1.0)
    deg = counts.sum(axis=1, keepdims=True)
    deg_inv = (1.0 / jnp.maximum(deg, 1.0)).astype(jnp.float32)
    # TODO(synk): int8 overflows if >127 parallel edges share one (dst, src) pair.
    return counts.astype(jnp.int8), deg_inv


def _pad_weight(w, c_p, cout_p):
    cin, cout = w.shape
    return jnp.zeros((c_p, cout_p), jnp.bfloat16).at[:cin, :cout].set(
        w.astype(jnp.bfloat16))


def _pad_bias(b, cout_p):
    cout = b.shape[-1]
    return jnp.zeros((1, cout_p), jnp.float32).at[:, :cout].set(b)


# --------------------------------------------------------------------------
# SAGE forward: conv1 -> relu -> dropout(eval) -> conv2
# --------------------------------------------------------------------------
def sage_forward(params, x, edge_index):
    n, cin = x.shape
    hid = params["w_l1"].shape[1]
    cout = params["w_l2"].shape[1]

    cin_p = _round_up(cin, LANE)
    hid_p = _round_up(hid, LANE)
    cout_p = _round_up(cout, LANE)
    n_p = _round_up(n, LANE)

    a_counts, deg_inv = build_adjacency_counts(edge_index, n, n_p)
    x_p = jnp.zeros((n_p, cin_p), jnp.bfloat16).at[:n, :cin].set(
        x.astype(jnp.bfloat16))

    wl1 = _pad_weight(params["w_l1"], cin_p, hid_p)
    wr1 = _pad_weight(params["w_r1"], cin_p, hid_p)
    b1 = _pad_bias(params["b1"], hid_p)
    wl2 = _pad_weight(params["w_l2"], hid_p, cout_p)
    wr2 = _pad_weight(params["w_r2"], hid_p, cout_p)
    b2 = _pad_bias(params["b2"], cout_p)

    h = sage_conv(a_counts, x_p, deg_inv, wl1, wr1, b1,
                  apply_relu=True, out_dtype=jnp.bfloat16)
    # TODO(synk): F.dropout(p=0.5) is identity in eval mode; training-mode RNG
    # dropout (pltpu.prng_random_bits mask) not wired up here.
    o = sage_conv(a_counts, h, deg_inv, wl2, wr2, b2,
                  apply_relu=False, out_dtype=jnp.float32)
    return o[:n, :cout]


# Pure-JAX f32 reference for correctness checking.
def sage_reference(params, x, edge_index):
    n = x.shape[0]
    src, dst = edge_index[0], edge_index[1]
    a = jnp.zeros((n, n), jnp.float32).at[dst, src].add(1.0)
    a_mean = a / jnp.maximum(a.sum(axis=1, keepdims=True), 1.0)
    h = a_mean @ x @ params["w_l1"] + params["b1"] + x @ params["w_r1"]
    h = jnp.maximum(h, 0.0)
    h = a_mean @ h @ params["w_l2"] + params["b2"] + h @ params["w_r2"]
    return h


def init_params(key, in_channels, hidden_channels, out_channels):
    ks = jax.random.split(key, 6)
    s1 = 1.0 / jnp.sqrt(in_channels)
    s2 = 1.0 / jnp.sqrt(hidden_channels)
    return {
        "w_l1": jax.random.uniform(ks[0], (in_channels, hidden_channels),
                                   jnp.float32, -s1, s1),
        "w_r1": jax.random.uniform(ks[1], (in_channels, hidden_channels),
                                   jnp.float32, -s1, s1),
        "b1": jax.random.uniform(ks[2], (1, hidden_channels),
                                 jnp.float32, -s1, s1),
        "w_l2": jax.random.uniform(ks[3], (hidden_channels, out_channels),
                                   jnp.float32, -s2, s2),
        "w_r2": jax.random.uniform(ks[4], (hidden_channels, out_channels),
                                   jnp.float32, -s2, s2),
        "b2": jax.random.uniform(ks[5], (1, out_channels),
                                 jnp.float32, -s2, s2),
    }


if __name__ == "__main__":
    num_nodes = 128
    in_channels = 16
    hidden_channels = 32
    out_channels = 8
    num_edges = 512

    key = jax.random.PRNGKey(0)
    k_x, k_e, k_p = jax.random.split(key, 3)

    x = jax.random.normal(k_x, (num_nodes, in_channels), jnp.float32)
    edge_index = jax.random.randint(k_e, (2, num_edges), 0, num_nodes,
                                    dtype=jnp.int32)
    params = init_params(k_p, in_channels, hidden_channels, out_channels)

    out = sage_forward(params, x, edge_index)
    out = jax.block_until_ready(out)

    ref = sage_reference(params, x, edge_index)
    assert out.shape == (num_nodes, out_channels)
    # bf16 MXU inputs (f32 accumulation, exact f32 mean normalization) vs f32
    # reference -> relaxed tolerance.
    assert jnp.allclose(out, ref, atol=5e-2, rtol=5e-2)

    print("KERNEL_OK")
</pallas_src>

<mosaic_0001>
module attributes {stable_mosaic.version = 11 : i64} {
  func.func @sage_conv_kernel(%arg0: i32, %arg1: i32, %arg2: memref<64x128xi8, #tpu.memory_space<vmem>>, %arg3: memref<128x128xbf16, #tpu.memory_space<vmem>>, %arg4: memref<64x128xbf16, #tpu.memory_space<vmem>>, %arg5: memref<64x1xf32, #tpu.memory_space<vmem>>, %arg6: memref<128x128xbf16, #tpu.memory_space<vmem>>, %arg7: memref<128x128xbf16, #tpu.memory_space<vmem>>, %arg8: memref<1x128xf32, #tpu.memory_space<vmem>>, %arg9: memref<64x128xbf16, #tpu.memory_space<vmem>>, %arg10: memref<64x128xf32, #tpu.memory_space<vmem>>) attributes {dimension_semantics = [#tpu.dimension_semantics<parallel>, #tpu.dimension_semantics<arbitrary>], iteration_bounds = array<i64: 2, 1>, scalar_prefetch = 0 : i64, scratch_operands = 1 : i64, tpu.core_type = #tpu.core_type<tc>, window_params = [{transform_indices = @transform_0, window_bounds = array<i64: 64, 128>}, {transform_indices = @transform_1, window_bounds = array<i64: 128, 128>}, {transform_indices = @transform_2, window_bounds = array<i64: 64, 128>}, {transform_indices = @transform_3, window_bounds = array<i64: 64, 1>}, {pipeline_mode = #tpu.pipeline_mode<synchronous>, transform_indices = @transform_4, window_bounds = array<i64: 128, 128>}, {pipeline_mode = #tpu.pipeline_mode<synchronous>, transform_indices = @transform_5, window_bounds = array<i64: 128, 128>}, {pipeline_mode = #tpu.pipeline_mode<synchronous>, transform_indices = @transform_6, window_bounds = array<i64: 1, 128>}, {transform_indices = @transform_7, window_bounds = array<i64: 64, 128>}]} {
    %c0_i32 = arith.constant 0 : i32
    %0 = arith.cmpi eq, %arg1, %c0_i32 : i32
    %1 = arith.extui %0 : i1 to i32
    %c0_i32_0 = arith.constant 0 : i32
    %2 = arith.cmpi ne, %1, %c0_i32_0 : i32
    scf.if %2 {
      %cst_10 = arith.constant 0.000000e+00 : f32
      %13 = vector.broadcast %cst_10 : f32 to vector<64x128xf32>
      %c0_11 = arith.constant 0 : index
      %c0_12 = arith.constant 0 : index
      %14 = vector.load %arg10[%c0_11, %c0_12] : memref<64x128xf32, #tpu.memory_space<vmem>>, vector<64x128xf32>
      tpu.vector_store %arg10[%c0_11, %c0_12], %13 {strides = array<i32>} : memref<64x128xf32, #tpu.memory_space<vmem>>, vector<64x128xf32>,
    } else {
    }
    %c0 = arith.constant 0 : index
    %c0_1 = arith.constant 0 : index
    %3 = vector.load %arg2[%c0, %c0_1] : memref<64x128xi8, #tpu.memory_space<vmem>>, vector<64x128xi8>
    %4 = arith.sitofp %3 : vector<64x128xi8> to vector<64x128xbf16>
    %c0_2 = arith.constant 0 : index
    %c0_3 = arith.constant 0 : index
    %5 = vector.load %arg10[%c0_2, %c0_3] : memref<64x128xf32, #tpu.memory_space<vmem>>, vector<64x128xf32>
    %c0_4 = arith.constant 0 : index
    %c0_5 = arith.constant 0 : index
    %6 = vector.load %arg3[%c0_4, %c0_5] : memref<128x128xbf16, #tpu.memory_space<vmem>>, vector<128x128xbf16>
    %cst = arith.constant dense<0.000000e+00> : vector<64x128xf32>
    %7 = tpu.matmul %4, %6, %cst {dimension_numbers = #tpu.dot_dimension_numbers<[1], [0], [0], [1], [0, 0, 1, 1], [], []>} : vector<64x128xbf16>, vector<128x128xbf16>, vector<64x128xf32> -> vector<64x128xf32>
    %8 = arith.addf %5, %7 : vector<64x128xf32>
    %c0_6 = arith.constant 0 : index
    %c0_7 = arith.constant 0 : index
    %9 = vector.load %arg10[%c0_6, %c0_7] : memref<64x128xf32, #tpu.memory_space<vmem>>, vector<64x128xf32>
    tpu.vector_store %arg10[%c0_6, %c0_7], %8 {strides = array<i32>} : memref<64x128xf32, #tpu.memory_space<vmem>>, vector<64x128xf32>,
    %c0_i32_8 = arith.constant 0 : i32
    %10 = arith.cmpi eq, %arg1, %c0_i32_8 : i32
    %11 = arith.extui %10 : i1 to i32
    %c0_i32_9 = arith.constant 0 : i32
    %12 = arith.cmpi ne, %11, %c0_i32_9 : i32
    scf.if %12 {
      %c0_10 = arith.constant 0 : index
      %c0_11 = arith.constant 0 : index
      %13 = vector.load %arg10[%c0_10, %c0_11] : memref<64x128xf32, #tpu.memory_space<vmem>>, vector<64x128xf32>
      %c0_12 = arith.constant 0 : index
      %c0_13 = arith.constant 0 : index
      %14 = vector.load %arg5[%c0_12, %c0_13] : memref<64x1xf32, #tpu.memory_space<vmem>>, vector<64x1xf32>
      %15 = vector.broadcast %14 : vector<64x1xf32> to vector<64x128xf32>
      %16 = arith.mulf %13, %15 : vector<64x128xf32>
      %17 = arith.truncf %16 : vector<64x128xf32> to vector<64x128xbf16>
      %c0_14 = arith.constant 0 : index
      %c0_15 = arith.constant 0 : index
      %18 = vector.load %arg6[%c0_14, %c0_15] : memref<128x128xbf16, #tpu.memory_space<vmem>>, vector<128x128xbf16>
      %cst_16 = arith.constant dense<0.000000e+00> : vector<64x128xf32>
      %19 = tpu.matmul %17, %18, %cst_16 {dimension_numbers = #tpu.dot_dimension_numbers<[1], [0], [0], [1], [0, 0, 1, 1], [], []>} : vector<64x128xbf16>, vector<128x128xbf16>, vector<64x128xf32> -> vector<64x128xf32>
      %c0_17 = arith.constant 0 : index
      %c0_18 = arith.constant 0 : index
      %20 = vector.load %arg4[%c0_17, %c0_18] : memref<64x128xbf16, #tpu.memory_space<vmem>>, vector<64x128xbf16>
      %c0_19 = arith.constant 0 : index
      %c0_20 = arith.constant 0 : index
      %21 = vector.load %arg7[%c0_19, %c0_20] : memref<128x128xbf16, #tpu.memory_space<vmem>>, vector<128x128xbf16>
      %cst_21 = arith.constant dense<0.000000e+00> : vector<64x128xf32>
      %22 = tpu.matmul %20, %21, %cst_21 {dimension_numbers = #tpu.dot_dimension_numbers<[1], [0], [0], [1], [0, 0, 1, 1], [], []>} : vector<64x128xbf16>, vector<128x128xbf16>, vector<64x128xf32> -> vector<64x128xf32>
      %23 = arith.addf %19, %22 : vector<64x128xf32>
      %c0_22 = arith.constant 0 : index
      %c0_23 = arith.constant 0 : index
      %24 = vector.load %arg8[%c0_22, %c0_23] : memref<1x128xf32, #tpu.memory_space<vmem>>, vector<1x128xf32>
      %25 = vector.broadcast %24 : vector<1x128xf32> to vector<64x128xf32>
      %26 = arith.addf %23, %25 : vector<64x128xf32>
      %cst_24 = arith.constant 0.000000e+00 : f32
      %27 = vector.broadcast %cst_24 : f32 to vector<64x128xf32>
      %28 = arith.maximumf %26, %27 : vector<64x128xf32>
      %29 = arith.truncf %28 : vector<64x128xf32> to vector<64x128xbf16>
      %c0_25 = arith.constant 0 : index
      %c0_26 = arith.constant 0 : index
      %30 = vector.load %arg9[%c0_25, %c0_26] : memref<64x128xbf16, #tpu.memory_space<vmem>>, vector<64x128xbf16>
      tpu.vector_store %arg9[%c0_25, %c0_26], %29 {strides = array<i32>} : memref<64x128xbf16, #tpu.memory_space<vmem>>, vector<64x128xbf16>,
    } else {
    }
    return
  }
  func.func @transform_0(%arg0: i32, %arg1: i32) -> (i32, i32) {
    %c0_i32 = arith.constant 0 : i32
    return %arg0, %arg1 : i32, i32
  }
  func.func @transform_1(%arg0: i32, %arg1: i32) -> (i32, i32) {
    %c0_i32 = arith.constant 0 : i32
    %c0_i32_0 = arith.constant 0 : i32
    return %arg1, %c0_i32 : i32, i32
  }
  func.func @transform_2(%arg0: i32, %arg1: i32) -> (i32, i32) {
    %c0_i32 = arith.constant 0 : i32
    %c0_i32_0 = arith.constant 0 : i32
    return %arg0, %c0_i32 : i32, i32
  }
  func.func @transform_3(%arg0: i32, %arg1: i32) -> (i32, i32) {
    %c0_i32 = arith.constant 0 : i32
    %c0_i32_0 = arith.constant 0 : i32
    return %arg0, %c0_i32 : i32, i32
  }
  func.func @transform_4(%arg0: i32, %arg1: i32) -> (i32, i32) {
    %c0_i32 = arith.constant 0 : i32
    %c0_i32_0 = arith.constant 0 : i32
    %c0_i32_1 = arith.constant 0 : i32
    return %c0_i32, %c0_i32_0 : i32, i32
  }
  func.func @transform_5(%arg0: i32, %arg1: i32) -> (i32, i32) {
    %c0_i32 = arith.constant 0 : i32
    %c0_i32_0 = arith.constant 0 : i32
    %c0_i32_1 = arith.constant 0 : i32
    return %c0_i32, %c0_i32_0 : i32, i32
  }
  func.func @transform_6(%arg0: i32, %arg1: i32) -> (i32, i32) {
    %c0_i32 = arith.constant 0 : i32
    %c0_i32_0 = arith.constant 0 : i32
    %c0_i32_1 = arith.constant 0 : i32
    return %c0_i32, %c0_i32_0 : i32, i32
  }
  func.func @transform_7(%arg0: i32, %arg1: i32) -> (i32, i32) {
    %c0_i32 = arith.constant 0 : i32
    %c0_i32_0 = arith.constant 0 : i32
    return %arg0, %c0_i32 : i32, i32
  }
}

</mosaic_0001>

<bundles_post_ra>
// kernel: tpu_custom_call.1
= control target key start
LH: loop header
LB: loop body
LE: loop exit
PB: predicated region body
PF: predicated region fallthrough
CT: control target
= control target key end

     0   :  { %s1962_s0 = inlined_call_operand.hbm [shape: s8[128,128], index: 0, kind: input, shape index: {}]   ;;  %s1963_s1 = inlined_call_operand.vmem [shape: bf16[128,128], index: 1, kind: input, shape index: {}]   ;;  %s1964_s2 = inlined_call_operand.vmem [shape: bf16[128,128], index: 2, kind: input, shape index: {}]   ;;  %s1965_s3 = inlined_call_operand.vmem [shape: f32[128,1], index: 3, kind: input, shape index: {}]   ;;  %s1966_s4 = inlined_call_operand.hbm [shape: bf16[128,128], index: 4, kind: input, shape index: {}]   ;;  %s1967_s5 = inlined_call_operand.hbm [shape: bf16[128,128], index: 5, kind: input, shape index: {}]   ;;  %s1968_s6 = inlined_call_operand.vmem [shape: f32[1,128], index: 6, kind: input, shape index: {}]   ;;  %s1969_s7 = inlined_call_operand.hbm [shape: bf16[128,128], index: 7, kind: output, shape index: {}]  }
   0x1   :  { %1974 = sst [smem:[#allocation14_spill]] %s1966_s4 }
   0x2   :  { %1975 = sst [smem:[#allocation15_spill]] %s1967_s5 }
   0x3   :  { %12 = vsyncpa [#allocation4], 0 }
   0x4   :  { %14 = vsyncpa [#allocation4 + $0x1], 0 }
   0x5   :  { %15 = vsyncpa [#allocation7], 0 }
   0x6   :  { %16 = vsyncpa [#allocation5], 0 }
   0x7   :  { %18 = vsyncpa [#allocation5 + $0x1], 0  ;;  %s1715_s24 = smov 0   ;;  %s1717_s25 = smov 0  }
   0x8   :  { %s1719_s26 = smov 0   ;;  %s1721_s27 = smov 0  }
   0x9   :  { %s1723_s28 = smov 0   ;;  %s1725_s29 = smov 0  }
   0xa LB: > { %s1160_s30 = sadd.s32 4294967295, %s1662_s29   ;;  %s1161_s8 = sadd.s32 4294967294, %s1662_s29   ;;  %s1662_s29 = sphi %s1725_s29, %s24_s29   ;;  %s1658_s28 = sphi %s1723_s28, %s1996_s28   ;;  %s1654_s27 = sphi %s1721_s27, %s1995_s27   ;;  %s1650_s26 = sphi %s1719_s26, %s1994_s26   ;;  %s1646_s25 = sphi %s1717_s25, %s1993_s25   ;;  %s1642_s24 = sphi %s1715_s24, %s1992_s24  }
   0xb   : > { %p58_p0 = scmp.ne.s32.totalorder %s1646_s25, %s1642_s24  ;;  %p1749_p1 = scmp.eq.s32.totalorder %s1160_s30, 0 }
   0xc   : > { %p1753_p2 = scmp.eq.s32.totalorder %s1160_s30, 1  ;;  %p229_p3 = scmp.eq.s32.totalorder %s1161_s8, 1 }
   0xd   : > { %s1976_s9 = scalar_select %p1749_p1, 1, 0 }
   0xe   : > { %p1759_p4 = por %p1749_p1, %p58_p0  ;;  %p1162_p5 = scmp.ge.s32.totalorder %s1662_s29, 1 }
   0xf   : > { %p1764_p6 = por %p229_p3, %p58_p0  ;;  %p236_p7 = scmp.lt.s32.totalorder %s1662_s29, 3 }
  0x10   : > { %s1978_s11 = scalar_select %p1759_p4, 1, 0 }
  0x11   : > { %s1979_s12 = scalar_select %p1764_p6, 1, 0 }
  0x12   : > { %p1769_p8 = pnand %p1162_p5, %p236_p7  ;;  %s1664_s14 = smov [#allocation6]  }
  0x13   : > { %s257_s15 = sshll.u32 %s1664_s14, 4  ;;  %s1665_s17 = smov [#allocation8]   ;;  %s258_s15 = int_to_ptr.vmem [resolvable:$true] %s257_s15 }
  0x14   : > { %p1390_p9 = pneg %p1769_p8  ;;  %s270_s18 = sshll.u32 %s1665_s17, 4  ;;  %s271_s18 = int_to_ptr.vmem [resolvable:$true] %s270_s18 }
  0x15   : > { %s1509_s19 = scalar_lea.vmem %s258_s15, 1024  ;;  %p1517_p5 = scmp.lt.s32.totalorder %s258_s15, %s258_s15 }
  0x16   : > { %p1778_p11 = pnand %p1390_p9, %p1749_p1  ;;  %p1510_p13 = scmp.ne.s32.totalorder %s258_s15, %s1509_s19 }
  0x17   : > { %p1518_p7 = scmp.lt.s32.totalorder %s1509_s19, %s1509_s19 }
  0x18   : > { %p1500_p12 = pneg %p1778_p11 }
  0x19   : > { %p1519_p10 = por %p1518_p7, %p1517_p5 }
  0x1a   : > { %p1512_p0 = pnand %p1510_p13, %p1500_p12 }
  0x1c   : > { %p1513_p3 = pneg %p1512_p0 }
  0x1e   : > { %p1520_p9 = pnand %p1519_p10, %p1513_p3 }
  0x20   : > { %1523 = shalt.err (!%p1520_p9)
}
  0x21   : > { %s1666_s20 = smov 64   ;;  %s1667_s21 = smov 4  }
  0x22   : > { %s1982_s4 = sld [smem:[#allocation14_spill]]  ;;  %s1535_s30 = scalar_lea.vmem %s271_s18, 1024 }
  0x23   : > { %p1536_p6 = scmp.ne.s32.totalorder %s271_s18, %s1535_s30  ;;  %p1543_p1 = scmp.lt.s32.totalorder %s271_s18, %s271_s18 }
  0x24   : > { %p1544_p4 = scmp.lt.s32.totalorder %s1535_s30, %s1535_s30 }
  0x25   : > { %p1538_p13 = pnand %p1536_p6, %p1500_p12 }
  0x26   : > { %p1545_p5 = por %p1544_p4, %p1543_p1 }
  0x27   : > { %p1539_p0 = pneg %p1538_p13 }
  0x28   : > { %1393 = dma.hbm_to_vmem [thread:$0]  (!%p1778_p11), %s1982_s4, 1024, %s258_s15, [#allocation7], %s1666_s20, %s1666_s20, %s1667_s21  }
  0x29   : > { %p1546_p10 = pnand %p1545_p5, %p1539_p0 }
  0x2b   : > { %1549 = shalt.err (!%p1546_p10)
}
  0x2c   : > { %s1983_s5 = sld [smem:[#allocation15_spill]]  ;;  %s36_s15 = sadd.s32 1, %s1658_s28 }
  0x2d   : > { %s45_s17 = sadd.s32 1, %s1650_s26  ;;  %p38_p1 = scmp.ge.s32.totalorder %s36_s15, 2 }
  0x2e   : > { %p52_p4 = scmp.ne.s32.totalorder %s1650_s26, %s1646_s25  ;;  %p53_p6 = scmp.eq.s32.totalorder %s1662_s29, 0 }
  0x2f   : > { %p1407_p12 = scmp.lt.s32.totalorder %s1662_s29, 2  ;;  %s1998_s15 = smov (%p38_p1, %s36_s15), 0 }
  0x30   : > { %1984 = sst [smem:[#allocation13_spill]] %s1998_s15  ;;  %p54_p3 = por %p53_p6, %p52_p4 }
  0x31   : > { %p1810_p7 = por %p1753_p2, %p52_p4  ;;  %s40_s19 = ssub.s32 %s1658_s28, %s1998_s15 }
  0x32   : > { %1396 = dma.hbm_to_vmem [thread:$0]  (!%p1778_p11), %s1983_s5, 1024, %s271_s18, [#allocation7], %s1666_s20, %s1666_s20, %s1667_s21  }
  0x33   : > { %s287_s22 = sand.u32 1, %s1650_s26   ;;  %p43_p9 = scmp.eq.s32.totalorder %s40_s19, 0 }
  0x34   : > { %s1167_s18 = sshll.u32 %s287_s22, 4  ;;  %s1221_s20 = sshll.u32 %s1658_s28, 8 }
  0x35   : > { %s1819_s21 = scalar_select %p43_p9, %s1650_s26, %s45_s17  }
  0x36   : > { %s298_s8 = scalar_lea.hbm %s1962_s0, %s1221_s20  ;;  %s291_s14 = scalar_lea.vmem [#allocation3], %s1167_s18 }
  0x37   : > { %s299_s4 = sshll.u32 %s291_s14, 4  ;;  %p1826_p11 = pnand %p1407_p12, %p54_p3  ;;  %s300_s4 = int_to_ptr.vmem [resolvable:$true] %s299_s4 }
  0x38   : > { %s288_s5 = scalar_lea.sflag [#allocation4], %s287_s22  ;;  %s1563_s19 = scalar_lea.vmem %s300_s4, 256 }
  0x39   : > { %p1552_p2 = pneg %p1826_p11  ;;  %p1564_p13 = scmp.ne.s32.totalorder %s300_s4, %s1563_s19 }
  0x3a   : > { %s1668_s17 = smov [#allocation3]  }
  0x3b   : > { %p1566_p0 = pnand %p1564_p13, %p1552_p2  ;;  %s1568_s15 = sshll.u32 %s1668_s17, 4  ;;  %s1569_s15 = int_to_ptr.vmem [resolvable:$false] %s1568_s15 }
  0x3c   : > { %s1570_s20 = scalar_lea.vmem %s1569_s15, 512  ;;  %p1571_p10 = scmp.lt.s32.totalorder %s300_s4, %s1569_s15 }
  0x3d   : > { %p1567_p5 = pneg %p1566_p0  ;;  %p1572_p1 = scmp.lt.s32.totalorder %s1570_s20, %s1563_s19 }
  0x3f   : > { %p1573_p4 = por %p1572_p1, %p1571_p10 }
  0x41   : > { %p1574_p6 = pnand %p1573_p4, %p1567_p5 }
  0x43   : > { %1577 = shalt.err (!%p1574_p6)
}
  0x44   : > { %s1669_s18 = smov 128   ;;  %s1670_s23 = smov 8  }
  0x45   : > { %1400 = dma.hbm_to_vmem [thread:$0]  (!%p1826_p11), %s298_s8, 256, %s300_s4, %s288_s5, %s1669_s18, %s1669_s18, %s1670_s23  }
  0x46   : > { %329 = sbr.rel (%p1769_p8) target bundleno = 546 (0x222), region = 48  ;;  %s1837_s22 = sand.u32 (!%p1769_p8), 1, %s1646_s25  }
  0x47   : > { %s1171_s30 = sshll.u32 (!%p1769_p8), %s1837_s22, 4  ;;  %s332_s15 = scalar_lea.sflag (!%p1769_p8), [#allocation4], %s1837_s22 }
  0x48   : > { %s1841_s14 = scalar_lea.vmem (!%p1769_p8), [#allocation3], %s1171_s30  ;;  %p1987_p12 = scmp.ne.s32.totalorder (!%p1769_p8), %s1978_s11, 0 }
  0x4b   : > { %1629 = dma.done.wait (%p1987_p12), %s332_s15, 256  }
  0x4c   : > { %1631 = vsyncadd (%p1987_p12), %s332_s15, 4294967040  ;;  %p1988_p3 = scmp.ne.s32.totalorder %s1976_s9, 0 }
  0x4e   : > { %1633 = dma.done.wait (%p1988_p3), [#allocation7], 2048  }
  0x4f   : > { %1635 = vsyncadd (%p1988_p3), [#allocation7], 4294965248  ;;  %s1175_s4 = sshll.u32 %s1654_s27, 3  ;;  %v1671_v0 = vmov 0   ;;  %v1470_v1 = vld [vmem:[%s1963_s1 + $0x38] sm:$0xff]   ;;  %v1471_v2 = vld [vmem:[%s1963_s1 + $0x30] sm:$0xff]  }
  0x50   : > { %1469 = vset.pattern.permute.xlu1 %v1671_v0  ;;  %1468 = vset.pattern.permute.xlu0 %v1671_v0  ;;  %p397_p8 = scmp.lt.s32.totalorder %s1175_s4, 15  ;;  %v1472_v3 = vld [vmem:[%s1963_s1 + $0x28] sm:$0xff]   ;;  %v1473_v4 = vld [vmem:[%s1963_s1 + $0x20] sm:$0xff]   ;;  %v1474_v9 = vld [vmem:[%s1963_s1 + $0x18] sm:$0xff]   ;;  %s1174_s30 = sshll.u32 %s1837_s22, 5 }
  0x51   : > { %1290 = vmatprep.subr.bf16.mxu0 %v1470_v1  ;;  %v422_v5 = vld [vmem:[%s1841_s14] sm:$0xff]  ;;  %v1478_v12 = vld [vmem:[#allocation8 + $0x38] sm:$0xff]   ;;  %v1480_v17 = vld [vmem:[#allocation8 + $0x28] sm:$0xff]   ;;  %s388_s15 = scalar_lea.vmem [#allocation9], %s1174_s30  ;;  %s1230_s13 = sshll.u32 %s1654_s27, 9 }
  0x52   : > { %s2000_s4 = smov (!%p397_p8, %s1175_s4), 15  ;;  %1291 = vmatpush3.bf16.msra.mxu0 %v1470_v1  ;;  %v424_v7 = vunpack.c.l.s8.bf16 %v422_v5  ;;  %v1479_v13 = vld [vmem:[#allocation8 + $0x30] sm:$0xff]   ;;  %1314 = vmatprep.subr.bf16.mxu1 %v1478_v12  ;;  %v1476_v18 = vld [vmem:[%s1963_s1 + $0x8] sm:$0xff]   ;;  %v1481_v21 = vld [vmem:[#allocation8 + $0x20] sm:$0xff]   ;;  %v425_v28 = vunpack.c.h.s8.bf16 %v422_v5  ;;  %s1019_s5 = sshll.u32 %s388_s15, 4  ;;  %s1909_s5 = int_to_ptr.vmem [resolvable:$true] %s1019_s5 }
  0x53   : > { %s1178_s9 = sshll.u32 %s2000_s4, 3  ;;  %1292 = vmatprep.subr.bf16.mxu0 %v1471_v2  ;;  %v1475_v14 = vld [vmem:[%s1963_s1 + $0x10] sm:$0xff]   ;;  %1315 = vmatpush3.bf16.msra.mxu1 %v1478_v12  ;;  %s1176_s8 = sshll.u32 %s2000_s4, 2  ;;  %v1477_v23 = vld [vmem:[%s1963_s1] sm:$0xff]   ;;  %v1482_v24 = vld [vmem:[#allocation8 + $0x18] sm:$0xff]  }
  0x54   : > { %s1867_s18 = scalar_lea.vmem %s1965_s3, %s1178_s9  ;;  %1306 = vmatprep.mubr.bf16.mxu0 %v424_v7  ;;  %1316 = vmatprep.subr.bf16.mxu1 %v1479_v13  ;;  %s1893_s20 = scalar_lea.vmem %s1964_s2, %s1176_s8  ;;  %v423_v25 = vld [vmem:[%s1841_s14 + $0x8] sm:$0xff]  ;;  %v1483_v26 = vld [vmem:[#allocation8 + $0x10] sm:$0xff]   ;;  %v1485_v32 = vld [vmem:[#allocation8] sm:$0xff]  }
  0x55   : > { %v596_v6 = vld [vmem:[%s1867_s18 + $0x20] sm:$0xff]  ;;  %v597_v10 = vld [vmem:[%s1867_s18 + $0x28] sm:$0xff]  ;;  %v595_v15 = vld [vmem:[%s1867_s18 + $0x18] sm:$0xff]  ;;  %v426_v29 = vunpack.c.l.s8.bf16 %v423_v25  ;;  %v427_v34 = vunpack.c.h.s8.bf16 %v423_v25  ;;  %s1914_s9 = scalar_lea.hbm %s1969_s7, %s1230_s13  ;;  %s1006_s10 = scalar_lea.sflag [#allocation5], %s1837_s22 }
  0x56   : > { %1293 = vmatpush3.bf16.msra.mxu0 %v1471_v2  ;;  %622 = vperm.xlu1 %1469, %v596_v6   ;;  %v592_v8 = vld [vmem:[%s1867_s18] sm:$0xff]  ;;  %v593_v11 = vld [vmem:[%s1867_s18 + $0x8] sm:$0xff]  ;;  %v594_v16 = vld [vmem:[%s1867_s18 + $0x10] sm:$0xff]  ;;  %s1578_s19 = scalar_lea.vmem %s1909_s5, 512  ;;  %s1672_s27 = smov [#allocation9]  }
  0x57   : > { %1294 = vmatprep.subr.bf16.mxu0 %v1472_v3  ;;  %602 = vperm.xlu0 %1468, %v592_v8   ;;  %v599_v19 = vld [vmem:[%s1867_s18 + $0x38] sm:$0xff]  ;;  %v598_v20 = vld [vmem:[%s1867_s18 + $0x30] sm:$0xff]  ;;  %v1487_v22 = vld [vmem:[%s1893_s20] sm:$0xff]   ;;  %p1579_p9 = scmp.ne.s32.totalorder %s1909_s5, %s1578_s19  ;;  %s1582_s17 = sshll.u32 %s1672_s27, 4  ;;  %s1583_s17 = int_to_ptr.vmem [resolvable:$false] %s1582_s17 }
  0x58   : > { %1317 = vmatpush3.bf16.msra.mxu1 %v1479_v13  ;;  %1330 = vmatprep.mubr.bf16.mxu1 %v1487_v22  ;;  %v1486_v27 = vld [vmem:[#allocation6 + $0x38] sm:$0xff]   ;;  %v1484_v30 = vld [vmem:[#allocation8 + $0x8] sm:$0xff]   ;;  %v1489_v31 = vld [vmem:[#allocation6 + $0x30] sm:$0xff]   ;;  %p1585_p13 = scmp.lt.s32.totalorder %s1909_s5, %s1583_s17 }
  0x59   : > { %1318 = vmatprep.subr.bf16.mxu1 %v1480_v17  ;;  %v1490_v33 = vld [vmem:[#allocation6 + $0x28] sm:$0xff]   ;;  %v1491_v35 = vld [vmem:[#allocation6 + $0x20] sm:$0xff]   ;;  %v1492_v37 = vld [vmem:[#allocation6 + $0x18] sm:$0xff]   ;;  %p1580_p11 = pnand %p1579_p9, %p1810_p7 }
  0x5a   : > { %1295 = vmatpush3.bf16.msra.mxu0 %v1472_v3  ;;  %627 = vperm.xlu1 %1469, %v597_v10   ;;  %v1488_v36 = vld [vmem:[%s1893_s20 + $0x8] sm:$0xff]   ;;  %v1493_v38 = vld [vmem:[#allocation6 + $0x10] sm:$0xff]   ;;  %v1496_v41 = vld [vmem:[%s1893_s20 + $0x18] sm:$0xff]  }
  0x5b   : > { %1296 = vmatprep.subr.bf16.mxu0 %v1473_v4  ;;  %607 = vperm.xlu0 %1468, %v593_v11   ;;  %v1494_v39 = vld [vmem:[#allocation6 + $0x8] sm:$0xff]   ;;  %v1495_v40 = vld [vmem:[%s1893_s20 + $0x10] sm:$0xff]   ;;  %v1497_v42 = vld [vmem:[#allocation6] sm:$0xff]   ;;  %p1581_p2 = pneg %p1580_p11  ;;  %s1584_s20 = scalar_lea.vmem %s1583_s17, 1024 }
  0x5c   : > { %1319 = vmatpush3.bf16.msra.mxu1 %v1480_v17  ;;  %p1586_p0 = scmp.lt.s32.totalorder %s1584_s20, %s1578_s19 }
  0x5d   : > { %1320 = vmatprep.subr.bf16.mxu1 %v1481_v21 }
  0x5e   : > { %1297 = vmatpush3.bf16.msra.mxu0 %v1473_v4  ;;  %617 = vperm.xlu1 %1469, %v595_v15   ;;  %p1587_p5 = por %p1586_p0, %p1585_p13 }
  0x5f   : > { %1298 = vmatprep.subr.bf16.mxu0 %v1474_v9  ;;  %612 = vperm.xlu0 %1468, %v594_v16   ;;  %v1207_v16 = vld [vmem:[%s1968_s6] ss:$0 sm:$0xff] }
  0x60   : > { %1321 = vmatpush3.bf16.msra.mxu1 %v1481_v21  ;;  %p1588_p10 = pnand %p1587_p5, %p1581_p2 }
  0x61   : > { %1322 = vmatprep.subr.bf16.mxu1 %v1482_v24 }
  0x62   : > { %1299 = vmatpush3.bf16.msra.mxu0 %v1474_v9  ;;  %637 = vperm.xlu1 %1469, %v599_v19  }
  0x63   : > { %1300 = vmatprep.subr.bf16.mxu0 %v1475_v14  ;;  %632 = vperm.xlu0 %1468, %v598_v20  }
  0x64   : > { %1323 = vmatpush3.bf16.msra.mxu1 %v1482_v24 }
  0x65   : > { %1324 = vmatprep.subr.bf16.mxu1 %v1483_v26 }
  0x66   : > { %1301 = vmatpush3.bf16.msra.mxu0 %v1475_v14 }
  0x67   : > { %1302 = vmatprep.subr.bf16.mxu0 %v1476_v18 }
  0x68   : > { %1325 = vmatpush3.bf16.msra.mxu1 %v1483_v26 }
  0x69   : > { %1326 = vmatprep.subr.bf16.mxu1 %v1484_v30 }
  0x6a   : > { %1303 = vmatpush3.bf16.msra.mxu0 %v1476_v18 }
  0x6b   : > { %1304 = vmatprep.subr.bf16.mxu0 %v1477_v23 }
  0x6c   : > { %1327 = vmatpush3.bf16.msra.mxu1 %v1484_v30 }
  0x6d   : > { %1328 = vmatprep.subr.bf16.mxu1 %v1485_v32 }
  0x6e   : > { %1305 = vmatpush3.bf16.msra.mxu0 %v1477_v23 }
  0x6f   : > { %1338 = vmatprep.subr.bf16.mxu0 %v1486_v27 }
  0x70   : > { %1329 = vmatpush3.bf16.msra.mxu1 %v1485_v32 }
  0x71   : > { %1307 = vmatmul.mubr.bf16.vlgmr.msra.gmra.mxu0 %v425_v28  ;;  %1362 = vmatprep.subr.bf16.mxu1 %v1486_v27 }
  0x72   : > { %1310 = vmatprep.mubr.bf16.mxu0 %v426_v29  ;;  %1339 = vmatpush3.bf16.msra.mxu0 %v1486_v27 }
  0x73   : > { %1340 = vmatprep.subr.bf16.mxu0 %v1489_v31  ;;  %1331 = vmatmul.mubr.bf16.vlgmr.msra.gmra.mxu1 %v1488_v36 }
  0x74   : > { %1370 = vmatpush3.bf16.msra.mxu1 %v1486_v27  ;;  %1334 = vmatprep.mubr.bf16.mxu1 %v1495_v40 }
  0x75   : > { %1363 = vmatprep.subr.bf16.mxu1 %v1489_v31 }
  0x76   : > { %1341 = vmatpush3.bf16.msra.mxu0 %v1489_v31 }
  0x77   : > { %1342 = vmatprep.subr.bf16.mxu0 %v1490_v33 }
  0x78   : > { %1371 = vmatpush3.bf16.msra.mxu1 %v1489_v31 }
  0x79   : > { %1311 = vmatmul.mubr.bf16.gmra.mxu0 %v427_v34  ;;  %1364 = vmatprep.subr.bf16.mxu1 %v1490_v33 }
  0x7a   : > { %1343 = vmatpush3.bf16.msra.mxu0 %v1490_v33 }
  0x7b   : > { %1344 = vmatprep.subr.bf16.mxu0 %v1491_v35  ;;  %1335 = vmatmul.mubr.bf16.gmra.mxu1 %v1496_v41 }
  0x7c   : > { %1372 = vmatpush3.bf16.msra.mxu1 %v1490_v33 }
  0x7d   : > { %1365 = vmatprep.subr.bf16.mxu1 %v1491_v35 }
  0x7e   : > { %1345 = vmatpush3.bf16.msra.mxu0 %v1491_v35 }
  0x7f   : > { %1346 = vmatprep.subr.bf16.mxu0 %v1492_v37 }
  0x80   : > { %1373 = vmatpush3.bf16.msra.mxu1 %v1491_v35 }
  0x81   : > { %1366 = vmatprep.subr.bf16.mxu1 %v1492_v37 }
  0x82   : > { %1347 = vmatpush3.bf16.msra.mxu0 %v1492_v37 }
  0x83   : > { %1348 = vmatprep.subr.bf16.mxu0 %v1493_v38 }
  0x84   : > { %1374 = vmatpush3.bf16.msra.mxu1 %v1492_v37 }
  0x85   : > { %1367 = vmatprep.subr.bf16.mxu1 %v1493_v38 }
  0x86   : > { %1349 = vmatpush3.bf16.msra.mxu0 %v1493_v38 }
  0x87   : > { %1350 = vmatprep.subr.bf16.mxu0 %v1494_v39 }
  0x88   : > { %1375 = vmatpush3.bf16.msra.mxu1 %v1493_v38 }
  0x89   : > { %1368 = vmatprep.subr.bf16.mxu1 %v1494_v39 }
  0x8a   : > { %1351 = vmatpush3.bf16.msra.mxu0 %v1494_v39 }
  0x8b   : > { %1352 = vmatprep.subr.bf16.mxu0 %v1497_v42 }
  0x8c   : > { %1376 = vmatpush3.bf16.msra.mxu1 %v1494_v39 }
  0x8d   : > { %1369 = vmatprep.subr.bf16.mxu1 %v1497_v42 }
  0x8e   : > { %1353 = vmatpush3.bf16.msra.mxu0 %v1497_v42 }
  0x90   : > { %1377 = vmatpush3.bf16.msra.mxu1 %v1497_v42 }
  0xd1   : > { %v623_v43 = vpop.permute.xlu1 %622 }
  0xd2   : > { %v603_v44 = vpop.permute.xlu0 %602 }
  0xd5   : > { %v628_v45 = vpop.permute.xlu1 %627 }
  0xd6   : > { %v608_v46 = vpop.permute.xlu0 %607 }
  0xd9   : > { %v618_v50 = vpop.permute.xlu1 %617 }
  0xda   : > { %v613_v51 = vpop.permute.xlu0 %612 }
  0xdd   : > { %v638_v62 = vpop.permute.xlu1 %637 }
  0xde   : > { %v633_v1 = vpop.permute.xlu0 %632 }
 0x131   : > { %v1308_v47 = vpop.f32.mrf.mxu0 }
 0x132   : > { %v642_v56 = vmul.f32 %v1308_v47, %v613_v51 }
 0x133   : > { %v534_v48 = vpop.f32.mrf.mxu0  ;;  %v1332_v7 = vpop.f32.mrf.mxu1 }
 0x134   : > { %v640_v54 = vmul.f32 %v603_v44, %v534_v48 }
 0x135   : > { %v1309_v49 = vpop.f32.mrf.mxu0  ;;  %v798_v8 = vpop.f32.mrf.mxu1 }
 0x136   : > { %v643_v52 = vmul.f32 %v1309_v49, %v618_v50 }
 0x137   : > { %v537_v53 = vpop.f32.mrf.mxu0  ;;  %v1333_v9 = vpop.f32.mrf.mxu1 }
 0x138   : > { %v641_v55 = vmul.f32 %v608_v46, %v537_v53  ;;  %v649_v59 = vpack.c.bf16 %v643_v52, %v642_v56 }
 0x139   : > { %v1312_v57 = vpop.f32.mrf.mxu0  ;;  %v801_v10 = vpop.f32.mrf.mxu1 }
 0x13a   : > { %v648_v58 = vpack.c.bf16 %v641_v55, %v640_v54  ;;  %v646_v4 = vmul.f32 %v1312_v57, %v633_v1 }
 0x13b   : > { %v550_v60 = vpop.f32.mrf.mxu0  ;;  %v1336_v11 = vpop.f32.mrf.mxu1 }
 0x13c   : > { %1354 = vmatprep.mubr.bf16.mxu0 %v648_v58  ;;  %v644_v2 = vmul.f32 %v623_v43, %v550_v60 }
 0x13d   : > { %v1313_v61 = vpop.f32.mrf.mxu0  ;;  %1355 = vmatmul.mubr.bf16.vlgmr.msra.gmra.mxu0 %v649_v59  ;;  %v814_v12 = vpop.f32.mrf.mxu1 }
 0x13e   : > { %v647_v63 = vmul.f32 %v1313_v61, %v638_v62 }
 0x13f   : > { %v553_v0 = vpop.f32.mrf.mxu0  ;;  %v1337_v15 = vpop.f32.mrf.mxu1 }
 0x140   : > { %v645_v3 = vmul.f32 %v628_v45, %v553_v0  ;;  %v651_v6 = vpack.c.bf16 %v647_v63, %v646_v4 }
 0x141   : > { %v817_v22 = vpop.f32.mrf.mxu1 }
 0x142   : > { %v650_v5 = vpack.c.bf16 %v645_v3, %v644_v2 }
 0x144   : > { %1358 = vmatprep.mubr.bf16.mxu1 %v650_v5 }
 0x145   : > { %1359 = vmatmul.mubr.bf16.vlgmr.msra.gmra.mxu1 %v651_v6 }
 0x1fd   : > { %v1356_v13 = vpop.f32.mrf.mxu0 }
 0x1fe   : > { %v920_v14 = vadd.f32 %v1356_v13, %v1332_v7 }
 0x1ff   : > { %v911_v17 = vpop.f32.mrf.mxu0 }
 0x200   : > { %v912_v18 = vadd.f32 %v911_v17, %v798_v8  ;;  %v951_v20 = vadd.f32 %v1207_v16, %v920_v14 }
 0x201   : > { %v1357_v19 = vpop.f32.mrf.mxu0 }
 0x202   : > { %v923_v21 = vadd.f32 %v1357_v19, %v1333_v9  ;;  %v949_v24 = vadd.f32 %v1207_v16, %v912_v18  ;;  %v959_v28 = vmax.f32 %v951_v20, 0.0 }
 0x203   : > { %v914_v23 = vpop.f32.mrf.mxu0 }
 0x204   : > { %v952_v25 = vadd.f32 %v1207_v16, %v923_v21  ;;  %v915_v26 = vadd.f32 %v914_v23, %v801_v10  ;;  %v957_v33 = vmax.f32 %v949_v24, 0.0 }
 0x205   : > { %v1360_v27 = vpop.f32.mrf.mxu1 }
 0x206   : > { %v960_v29 = vmax.f32 %v952_v25, 0.0  ;;  %v950_v30 = vadd.f32 %v1207_v16, %v915_v26  ;;  %v936_v31 = vadd.f32 %v1360_v27, %v1336_v11 }
 0x207   : > { %v927_v32 = vpop.f32.mrf.mxu1 }
 0x208   : > { %v1239_v34 = vpack.c.bf16 %v960_v29, %v959_v28  ;;  %v958_v35 = vmax.f32 %v950_v30, 0.0  ;;  %v928_v36 = vadd.f32 %v927_v32, %v814_v12  ;;  %v955_v39 = vadd.f32 %v1207_v16, %v936_v31 }
 0x209   : > { %v1361_v37 = vpop.f32.mrf.mxu1 }
 0x20a   : > { %1251 = vst [vmem:[%s388_s15 + $0x8] sm:$0xff] %v1239_v34   ;;  %v1234_v38 = vpack.c.bf16 %v958_v35, %v957_v33  ;;  %v939_v40 = vadd.f32 %v1361_v37, %v1337_v15  ;;  %v953_v42 = vadd.f32 %v1207_v16, %v928_v36  ;;  %v963_v45 = vmax.f32 %v955_v39, 0.0 }
 0x20b   : > { %v930_v41 = vpop.f32.mrf.mxu1 }
 0x20c   : > { %1235 = vst [vmem:[%s388_s15] sm:$0xff] %v1234_v38   ;;  %v956_v43 = vadd.f32 %v1207_v16, %v939_v40  ;;  %v931_v44 = vadd.f32 %v930_v41, %v817_v22  ;;  %v961_v48 = vmax.f32 %v953_v42, 0.0 }
 0x20e   : > { %v964_v46 = vmax.f32 %v956_v43, 0.0  ;;  %v954_v47 = vadd.f32 %v1207_v16, %v931_v44 }
 0x210   : > { %v1249_v49 = vpack.c.bf16 %v964_v46, %v963_v45  ;;  %v962_v50 = vmax.f32 %v954_v47, 0.0 }
 0x212   : > { %1253 = vst [vmem:[%s388_s15 + $0x18] sm:$0xff] %v1249_v49   ;;  %v1244_v51 = vpack.c.bf16 %v962_v50, %v961_v48 }
 0x214   : > { %1252 = vst [vmem:[%s388_s15 + $0x10] sm:$0xff] %v1244_v51  }
 0x215   : > { %1591 = shalt.err (!%p1588_p10)
}
 0x216   : > { %s1592_s4 = scalar_lea.hbm %s1914_s9, 512  ;;  %s1596_s18 = scalar_lea.hbm %s1969_s7, 1024 }
 0x217   : > { %p1593_p1 = scmp.ne.s32.totalorder %s1914_s9, %s1592_s4  ;;  %p1597_p12 = scmp.lt.s32.totalorder %s1914_s9, %s1969_s7 }
 0x218   : > { %p1598_p3 = scmp.lt.s32.totalorder %s1596_s18, %s1592_s4 }
 0x219   : > { %p1594_p4 = pnand %p1593_p1, %p1810_p7 }
 0x21a   : > { %p1599_p8 = por %p1598_p3, %p1597_p12 }
 0x21b   : > { %p1595_p6 = pneg %p1594_p4 }
 0x21d   : > { %p1600_p9 = pnand %p1599_p8, %p1595_p6 }
 0x21f   : > { %1603 = shalt.err (!%p1600_p9)
}
 0x220   : > { %s1673_s13 = smov 64   ;;  %s1674_s11 = smov 4  }
 0x221   : > { %1388 = dma.vmem_to_hbm [thread:$0]  (%p1810_p7), %s1909_s5, 512, %s1914_s9, %s1006_s10, %s1673_s13, %s1673_s13, %s1674_s11  }
 0x222 PF: > { %s1034_s8 = sand.u32 1, %s1642_s24   ;;  %p1989_p11 = scmp.ne.s32.totalorder %s1979_s12, 0 }
 0x223   : > { %p1990_p2 = scmp.ge.s32.totalorder %s1662_s29, 2  ;;  %s1035_s19 = scalar_lea.sflag [#allocation5], %s1034_s8 }
 0x225   : > { %p1402_p13 = pnand %p1990_p2, %p1989_p11 }
 0x227   : > { %p1403_p0 = pneg %p1402_p13 }
 0x229   : > { %1637 = dma.done.wait (%p1403_p0), %s1035_s19, 512  }
 0x22a   : > { %1639 = vsyncadd (%p1403_p0), %s1035_s19, 4294966784  ;;  %s24_s29 = sadd.s32 1, %s1662_s29   ;;  %s1991_s16 = sld [smem:[#allocation13_spill]] }
 0x22b   : > { %p21_p5 = scmp.ge.s32.totalorder %s24_s29, 4   ;;  %s1992_s24 = smov %s1646_s25 }
 0x22c   : > { %s1993_s25 = smov %s1650_s26  ;;  %s1994_s26 = smov %s1819_s21 }
 0x22d   : > { %s1995_s27 = smov %s1658_s28  ;;  %23 = sbr.rel (!%p21_p5) target bundleno = 10 (0xa), region = 118 }
 0x230   : > { %s1996_s28 = smov %s1991_s16 }
 0x232   :  { %1040 = vsyncpa [#allocation4], 1 }
 0x233   :  { %1042 = vsyncpa [#allocation4 + $0x1], 1 }
 0x234   :  { %1043 = vsyncpa [#allocation7], 1 }
 0x235   :  { %1044 = vsyncpa [#allocation5], 1 }
 0x236   :  { %1046 = vsyncpa [#allocation5 + $0x1], 1 }

</bundles_post_ra>
